<compile_context>
chip_gen: v7x
topology: tpu7x:2x2x1
jax: 0.10.0
libtpu: 0.0.40
codegen_flags: <defaults>
</compile_context>

<pallas_src>
import jax
import jax.numpy as jnp
from jax.experimental import pallas as pl
from jax.experimental.pallas import tpu as pltpu

# ---- Hyper-parameters (HP.*) chosen small & consistent with the module -------------
AUTOREGRESSIVE_EMBEDDING_SIZE = 32   # HP.autoregressive_embedding_size
ENTITY_EMBEDDING_SIZE = 16           # HP.entity_embedding_size
ORIGINAL_32 = 32                     # HP.original_32
ORIGINAL_256 = 256                   # HP.original_256 (fc2 — defined but unused in forward)
MAX_ENTITY = 128                     # HP.max_entity
NUM_ACTION_TYPES = 16                # size of the action_involve_target_mask lookup table

MASK_FILL = -1.0e9

# Packed-parameter layout: one [PACKED_ROWS, 32] f32 buffer, 8-row aligned segments.
_WC_OFF, _BC_OFF = 0, 16      # wc: rows 0:16,   bc: row 16
_W1_OFF, _B1_OFF = 24, 56     # w1: rows 24:56,  b1: row 56
_W3_OFF, _B3_OFF = 64, 192    # w3: rows 64:192, b3: row 192
PACKED_ROWS = 200


# ------------------------------- Pallas kernel --------------------------------------
def select_target_kernel(ae_ref, ent_ref, mask_ref, gumbel_ref, packed_ref,
                         sel_ref, logp_ref, ae_out_ref):
    n = ent_ref.shape[2]  # MAX_ENTITY (lane axis)

    # Static, 8-row-aligned slices of the packed parameter buffer.
    wc = packed_ref[_WC_OFF:_WC_OFF + ENTITY_EMBEDDING_SIZE, :]            # [EE, 32]
    bc = packed_ref[_BC_OFF:_BC_OFF + 1, :]                                # [1, 32]
    w1 = packed_ref[_W1_OFF:_W1_OFF + AUTOREGRESSIVE_EMBEDDING_SIZE, :]    # [32, 32]
    b1 = packed_ref[_B1_OFF:_B1_OFF + 1, :]                                # [1, 32]
    w3 = packed_ref[_W3_OFF:_W3_OFF + MAX_ENTITY, :]                       # [128, 32]
    b3 = packed_ref[_B3_OFF:_B3_OFF + 1, :]                                # [1, 32]

    ae = ae_ref[...]                                                       # [Bt, 32]

    # query = fc1(autoregressive_embedding): [Bt, 32]
    query = jnp.dot(ae, w1, preferred_element_type=jnp.float32) + b1

    # Fold the k=1 conv into the query (no [Bt, N, 32] key intermediate):
    #   q_fold[b,e] = sum_o wc[e,o] * query[b,o]     -> kept as [Bt, EE, 1]
    #   c[b]        = bc . query[b]
    #   y[b,n]      = sum_e ent_t[b,e,n] * q_fold[b,e] + c[b]
    q_fold = jnp.sum(query[:, None, :] * wc[None, :, :],
                     axis=-1, keepdims=True)                               # [Bt, EE, 1]
    c = jnp.sum(query * bc, axis=-1, keepdims=True)                        # [Bt, 1]
    y = jnp.sum(ent_ref[...] * q_fold, axis=1) + c                         # [Bt, N]

    # logits = y + ~target_mask * -1e9   (additive, exactly like the PyTorch module)
    mask = mask_ref[...]                                                   # 1.0 selectable
    logits = y + (1.0 - mask) * MASK_FILL

    # numerically stable log-softmax
    m = jnp.max(logits, axis=-1, keepdims=True)
    shifted = logits - m
    lse = jnp.log(jnp.sum(jnp.exp(shifted), axis=-1, keepdims=True))
    log_probs = shifted - lse                                              # [Bt, N]

    # Categorical sample via Gumbel-max (first-max tie-break)
    z = logits + gumbel_ref[...]
    zmax = jnp.max(z, axis=-1, keepdims=True)
    iota = jax.lax.broadcasted_iota(jnp.int32, z.shape, 1)
    cand = jnp.where(z >= zmax, iota, jnp.int32(n))
    select = jnp.min(cand, axis=-1, keepdims=True)                         # [Bt, 1] int32

    # log-prob of the sample (involve-mask gate applied in the wrapper)
    onehot = (iota == select).astype(jnp.float32)                          # [Bt, N]
    logp = jnp.sum(log_probs * onehot, axis=-1, keepdims=True)             # [Bt, 1]

    # autoregressive_embedding += fc3(one_hot(select_target))
    ae_out = ae + jnp.dot(onehot, w3, preferred_element_type=jnp.float32) + b3

    sel_ref[...] = select
    logp_ref[...] = logp
    ae_out_ref[...] = ae_out.astype(ae_out_ref.dtype)


# ------------------------------ Parameters / glue ------------------------------------
def init_params(seed=0):
    """Deterministic parameter init (torch-Linear-style uniform bounds)."""
    def uni(key, shape, fan_in):
        bound = 1.0 / jnp.sqrt(jnp.float32(fan_in))
        return jax.random.uniform(key, shape, jnp.float32, -bound, bound)

    ks = jax.random.split(jax.random.PRNGKey(seed), 8)
    params = {
        # conv: Conv1d(ENTITY_EMB -> 32, kernel 1) stored as [in, out]
        "wc": uni(ks[0], (ENTITY_EMBEDDING_SIZE, ORIGINAL_32), ENTITY_EMBEDDING_SIZE),
        "bc": uni(ks[1], (1, ORIGINAL_32), ENTITY_EMBEDDING_SIZE),
        # fc1: Linear(AE -> 32) stored as [in, out]
        "w1": uni(ks[2], (AUTOREGRESSIVE_EMBEDDING_SIZE, ORIGINAL_32),
                  AUTOREGRESSIVE_EMBEDDING_SIZE),
        "b1": uni(ks[3], (1, ORIGINAL_32), AUTOREGRESSIVE_EMBEDDING_SIZE),
        # fc3: Linear(MAX_ENTITY -> AE) stored as [in, out]
        "w3": uni(ks[4], (MAX_ENTITY, AUTOREGRESSIVE_EMBEDDING_SIZE), MAX_ENTITY),
        "b3": uni(ks[5], (1, AUTOREGRESSIVE_EMBEDDING_SIZE), MAX_ENTITY),
        # fc2: Linear(ENTITY_EMB -> 256) — defined in __init__ but unused in forward
        "w2": uni(ks[6], (ENTITY_EMBEDDING_SIZE, ORIGINAL_256), ENTITY_EMBEDDING_SIZE),
        "b2": uni(ks[7], (1, ORIGINAL_256), ENTITY_EMBEDDING_SIZE),
    }
    # action_involve_target_mask lookup table (deterministic synthetic version)
    params["involve_table"] = (jnp.arange(NUM_ACTION_TYPES) % 2).astype(jnp.float32)

    # Pack the kernel-side weights/biases into one VMEM-friendly [200, 32] buffer.
    packed = jnp.zeros((PACKED_ROWS, ORIGINAL_32), jnp.float32)
    packed = packed.at[_WC_OFF:_WC_OFF + ENTITY_EMBEDDING_SIZE].set(params["wc"])
    packed = packed.at[_BC_OFF:_BC_OFF + 1].set(params["bc"])
    packed = packed.at[_W1_OFF:_W1_OFF + AUTOREGRESSIVE_EMBEDDING_SIZE].set(params["w1"])
    packed = packed.at[_B1_OFF:_B1_OFF + 1].set(params["b1"])
    packed = packed.at[_W3_OFF:_W3_OFF + MAX_ENTITY].set(params["w3"])
    packed = packed.at[_B3_OFF:_B3_OFF + 1].set(params["b3"])
    params["packed"] = packed
    return params


def _pick_batch_block(batch):
    """Largest 8-aligned batch tile that divides B (falls back to whole batch)."""
    for bb in (256, 128, 64, 32, 16, 8):
        if batch % bb == 0:
            return bb
    return batch


@jax.jit
def select_target_head_forward(params, autoregressive_embedding, entity_embedding,
                               action_type, target_mask, gumbel):
    B = autoregressive_embedding.shape[0]
    # Lane-dense entity layout: [B, EE, MAX_ENTITY] (MAX_ENTITY=128 fills the lanes).
    ent_t = jnp.swapaxes(
        entity_embedding.reshape(B, MAX_ENTITY, ENTITY_EMBEDDING_SIZE), 1, 2)
    mask = target_mask.astype(jnp.float32)

    bb = _pick_batch_block(B)
    grid = (B // bb,)
    batched2 = lambda i: (i, 0)

    in_specs = [
        pl.BlockSpec((bb, AUTOREGRESSIVE_EMBEDDING_SIZE), batched2),          # ae
        pl.BlockSpec((bb, ENTITY_EMBEDDING_SIZE, MAX_ENTITY),
                     lambda i: (i, 0, 0)),                                    # ent_t
        pl.BlockSpec((bb, MAX_ENTITY), batched2),                             # mask
        pl.BlockSpec((bb, MAX_ENTITY), batched2),                             # gumbel
        pl.BlockSpec((PACKED_ROWS, ORIGINAL_32), lambda i: (0, 0)),           # weights (resident)
    ]
    out_specs = (
        pl.BlockSpec((bb, 1), batched2),
        pl.BlockSpec((bb, 1), batched2),
        pl.BlockSpec((bb, AUTOREGRESSIVE_EMBEDDING_SIZE), batched2),
    )
    out_shapes = (
        jax.ShapeDtypeStruct((B, 1), jnp.int32),
        jax.ShapeDtypeStruct((B, 1), jnp.float32),
        jax.ShapeDtypeStruct((B, AUTOREGRESSIVE_EMBEDDING_SIZE), jnp.float32),
    )

    sel, logp, ae_out = pl.pallas_call(
        select_target_kernel,
        out_shape=out_shapes,
        grid=grid,
        in_specs=in_specs,
        out_specs=out_specs,
        compiler_params=pltpu.CompilerParams(dimension_semantics=("parallel",)),
    )(autoregressive_embedding, ent_t, mask, gumbel, params["packed"])

    # Glue: involve-mask lookup + gate (tiny [B] elementwise op, removes a
    # lane-width-1 VMEM kernel input).
    involve = params["involve_table"][action_type].astype(jnp.float32)
    return sel[:, 0], logp[:, 0] * involve, ae_out


# -------------------------------------- main -----------------------------------------
if __name__ == "__main__":
    B = 2
    params = init_params(seed=0)

    key = jax.random.PRNGKey(0)
    k_ae, k_ent, k_act, k_mask, k_gum = jax.random.split(key, 5)

    autoregressive_embedding = jax.random.normal(
        k_ae, (B, AUTOREGRESSIVE_EMBEDDING_SIZE), jnp.float32)
    entity_embedding = jax.random.normal(
        k_ent, (B, MAX_ENTITY * ENTITY_EMBEDDING_SIZE), jnp.float32)
    action_type = jax.random.randint(k_act, (B,), 0, NUM_ACTION_TYPES, jnp.int32)
    target_mask = jax.random.bernoulli(k_mask, 0.5, (B, MAX_ENTITY))
    # guarantee at least one valid target per row
    target_mask = target_mask.at[:, 0].set(True)

    # Gumbel noise for Categorical sampling (Gumbel-max trick), generated in glue
    u = jax.random.uniform(k_gum, (B, MAX_ENTITY), jnp.float32,
                           minval=1e-20, maxval=1.0)
    gumbel = -jnp.log(-jnp.log(u))

    sel, logp, ae_out = select_target_head_forward(
        params, autoregressive_embedding, entity_embedding,
        action_type, target_mask, gumbel)
    jax.block_until_ready((sel, logp, ae_out))

    # Shape / sanity checks
    assert sel.shape == (B,) and logp.shape == (B,)
    assert ae_out.shape == (B, AUTOREGRESSIVE_EMBEDDING_SIZE)
    assert bool(jnp.all((sel >= 0) & (sel < MAX_ENTITY)))
    assert bool(jnp.all(jnp.isfinite(logp))) and bool(jnp.all(jnp.isfinite(ae_out)))
    assert bool(jnp.all(jnp.take_along_axis(target_mask, sel[:, None], axis=1)))

    # Pure-JAX reference (un-folded conv path); tolerant to f32 rounding in the sampler.
    ent_r = entity_embedding.reshape(B, MAX_ENTITY, ENTITY_EMBEDDING_SIZE)
    key_r = jnp.einsum("bne,eo->bno", ent_r, params["wc"]) + params["bc"]
    query_r = autoregressive_embedding @ params["w1"] + params["b1"]
    y_r = jnp.einsum("bno,bo->bn", key_r, query_r)
    logits_r = y_r + (1.0 - target_mask.astype(jnp.float32)) * MASK_FILL
    z_r = logits_r + gumbel
    z_sel = jnp.take_along_axis(z_r, sel[:, None], axis=-1)[:, 0]
    assert bool(jnp.all(z_sel >= jnp.max(z_r, axis=-1) - 1e-3))   # sampled = (near-)argmax
    logp_all_r = jax.nn.log_softmax(logits_r, axis=-1)
    involve_r = params["involve_table"][action_type]
    logp_r = jnp.take_along_axis(logp_all_r, sel[:, None], axis=-1)[:, 0] * involve_r
    onehot_r = jax.nn.one_hot(sel, MAX_ENTITY, dtype=jnp.float32)
    ae_r = autoregressive_embedding + onehot_r @ params["w3"] + params["b3"]
    assert bool(jnp.allclose(logp, logp_r, atol=1e-4, rtol=1e-4))
    assert bool(jnp.allclose(ae_out, ae_r, atol=1e-4, rtol=1e-4))

    print("KERNEL_OK")
</pallas_src>

<mosaic_0001>
module attributes {stable_mosaic.version = 11 : i64} {
  func.func @select_target_kernel(%arg0: i32, %arg1: memref<2x32xf32, #tpu.memory_space<vmem>>, %arg2: memref<2x16x128xf32, #tpu.memory_space<vmem>>, %arg3: memref<2x128xf32, #tpu.memory_space<vmem>>, %arg4: memref<2x128xf32, #tpu.memory_space<vmem>>, %arg5: memref<200x32xf32, #tpu.memory_space<vmem>>, %arg6: memref<2x1xi32, #tpu.memory_space<vmem>>, %arg7: memref<2x1xf32, #tpu.memory_space<vmem>>, %arg8: memref<2x32xf32, #tpu.memory_space<vmem>>) attributes {dimension_semantics = [#tpu.dimension_semantics<parallel>], iteration_bounds = array<i64: 1>, scalar_prefetch = 0 : i64, scratch_operands = 0 : i64, tpu.core_type = #tpu.core_type<tc>, window_params = [{transform_indices = @transform_0, window_bounds = array<i64: 2, 32>}, {transform_indices = @transform_1, window_bounds = array<i64: 2, 16, 128>}, {transform_indices = @transform_2, window_bounds = array<i64: 2, 128>}, {transform_indices = @transform_3, window_bounds = array<i64: 2, 128>}, {pipeline_mode = #tpu.pipeline_mode<synchronous>, transform_indices = @transform_4, window_bounds = array<i64: 200, 32>}, {transform_indices = @transform_5, window_bounds = array<i64: 2, 1>}, {transform_indices = @transform_6, window_bounds = array<i64: 2, 1>}, {transform_indices = @transform_7, window_bounds = array<i64: 2, 32>}]} {
    %c0 = arith.constant 0 : index
    %c0_0 = arith.constant 0 : index
    %0 = vector.load %arg5[%c0, %c0_0] : memref<200x32xf32, #tpu.memory_space<vmem>>, vector<16x32xf32>
    %c16 = arith.constant 16 : index
    %c0_1 = arith.constant 0 : index
    %1 = vector.load %arg5[%c16, %c0_1] : memref<200x32xf32, #tpu.memory_space<vmem>>, vector<1x32xf32>
    %c24 = arith.constant 24 : index
    %c0_2 = arith.constant 0 : index
    %2 = vector.load %arg5[%c24, %c0_2] : memref<200x32xf32, #tpu.memory_space<vmem>>, vector<32x32xf32>
    %c56 = arith.constant 56 : index
    %c0_3 = arith.constant 0 : index
    %3 = vector.load %arg5[%c56, %c0_3] : memref<200x32xf32, #tpu.memory_space<vmem>>, vector<1x32xf32>
    %c64 = arith.constant 64 : index
    %c0_4 = arith.constant 0 : index
    %4 = vector.load %arg5[%c64, %c0_4] : memref<200x32xf32, #tpu.memory_space<vmem>>, vector<128x32xf32>
    %c192 = arith.constant 192 : index
    %c0_5 = arith.constant 0 : index
    %5 = vector.load %arg5[%c192, %c0_5] : memref<200x32xf32, #tpu.memory_space<vmem>>, vector<1x32xf32>
    %c0_6 = arith.constant 0 : index
    %c0_7 = arith.constant 0 : index
    %6 = vector.load %arg1[%c0_6, %c0_7] : memref<2x32xf32, #tpu.memory_space<vmem>>, vector<2x32xf32>
    %cst = arith.constant dense<0.000000e+00> : vector<2x32xf32>
    %7 = tpu.matmul %6, %2, %cst {dimension_numbers = #tpu.dot_dimension_numbers<[1], [0], [0], [1], [0, 0, 1, 1], [], []>} : vector<2x32xf32>, vector<32x32xf32>, vector<2x32xf32> -> vector<2x32xf32>
    %8 = vector.broadcast %3 : vector<1x32xf32> to vector<2x32xf32>
    %9 = arith.addf %7, %8 : vector<2x32xf32>
    %10 = vector.shape_cast %9 : vector<2x32xf32> to vector<2x1x32xf32>
    %11 = vector.shape_cast %0 : vector<16x32xf32> to vector<1x16x32xf32>
    %12 = vector.broadcast %10 : vector<2x1x32xf32> to vector<2x16x32xf32>
    %13 = vector.broadcast %11 : vector<1x16x32xf32> to vector<2x16x32xf32>
    %14 = arith.mulf %12, %13 : vector<2x16x32xf32>
    %cst_8 = arith.constant dense<0.000000e+00> : vector<2x16xf32>
    %15 = vector.multi_reduction <add>, %14, %cst_8 [2] : vector<2x16x32xf32> to vector<2x16xf32>
    %16 = vector.shape_cast %15 : vector<2x16xf32> to vector<2x16x1xf32>
    %17 = vector.broadcast %1 : vector<1x32xf32> to vector<2x32xf32>
    %18 = arith.mulf %9, %17 : vector<2x32xf32>
    %cst_9 = arith.constant dense<0.000000e+00> : vector<2xf32>
    %19 = vector.multi_reduction <add>, %18, %cst_9 [1] : vector<2x32xf32> to vector<2xf32>
    %20 = vector.shape_cast %19 : vector<2xf32> to vector<2x1xf32>
    %c0_10 = arith.constant 0 : index
    %c0_11 = arith.constant 0 : index
    %c0_12 = arith.constant 0 : index
    %21 = vector.load %arg2[%c0_10, %c0_11, %c0_12] : memref<2x16x128xf32, #tpu.memory_space<vmem>>, vector<2x16x128xf32>
    %22 = vector.broadcast %16 : vector<2x16x1xf32> to vector<2x16x128xf32>
    %23 = arith.mulf %21, %22 : vector<2x16x128xf32>
    %cst_13 = arith.constant dense<0.000000e+00> : vector<2x128xf32>
    %24 = vector.multi_reduction <add>, %23, %cst_13 [1] : vector<2x16x128xf32> to vector<2x128xf32>
    %25 = vector.broadcast %20 : vector<2x1xf32> to vector<2x128xf32>
    %26 = arith.addf %24, %25 : vector<2x128xf32>
    %c0_14 = arith.constant 0 : index
    %c0_15 = arith.constant 0 : index
    %27 = vector.load %arg3[%c0_14, %c0_15] : memref<2x128xf32, #tpu.memory_space<vmem>>, vector<2x128xf32>
    %cst_16 = arith.constant 1.000000e+00 : f32
    %28 = vector.broadcast %cst_16 : f32 to vector<2x128xf32>
    %29 = arith.subf %28, %27 : vector<2x128xf32>
    %cst_17 = arith.constant -1.000000e+09 : f32
    %30 = vector.broadcast %cst_17 : f32 to vector<2x128xf32>
    %31 = arith.mulf %29, %30 : vector<2x128xf32>
    %32 = arith.addf %26, %31 : vector<2x128xf32>
    %cst_18 = arith.constant dense<0xFF800000> : vector<2xf32>
    %33 = vector.multi_reduction <maximumf>, %32, %cst_18 [1] : vector<2x128xf32> to vector<2xf32>
    %34 = vector.shape_cast %33 : vector<2xf32> to vector<2x1xf32>
    %35 = vector.broadcast %34 : vector<2x1xf32> to vector<2x128xf32>
    %36 = arith.subf %32, %35 : vector<2x128xf32>
    %37 = math.exp %36 : vector<2x128xf32>
    %cst_19 = arith.constant dense<0.000000e+00> : vector<2xf32>
    %38 = vector.multi_reduction <add>, %37, %cst_19 [1] : vector<2x128xf32> to vector<2xf32>
    %39 = vector.shape_cast %38 : vector<2xf32> to vector<2x1xf32>
    %40 = math.log %39 : vector<2x1xf32>
    %41 = vector.broadcast %40 : vector<2x1xf32> to vector<2x128xf32>
    %42 = arith.subf %36, %41 : vector<2x128xf32>
    %c0_20 = arith.constant 0 : index
    %c0_21 = arith.constant 0 : index
    %43 = vector.load %arg4[%c0_20, %c0_21] : memref<2x128xf32, #tpu.memory_space<vmem>>, vector<2x128xf32>
    %44 = arith.addf %32, %43 : vector<2x128xf32>
    %cst_22 = arith.constant dense<0xFF800000> : vector<2xf32>
    %45 = vector.multi_reduction <maximumf>, %44, %cst_22 [1] : vector<2x128xf32> to vector<2xf32>
    %46 = vector.shape_cast %45 : vector<2xf32> to vector<2x1xf32>
    %47 = tpu.iota {dimensions = array<i32: 1>} : vector<2x128xi32>
    %48 = vector.broadcast %46 : vector<2x1xf32> to vector<2x128xf32>
    %49 = arith.cmpf oge, %44, %48 : vector<2x128xf32>
    %c128_i32 = arith.constant 128 : i32
    %50 = vector.broadcast %c128_i32 : i32 to vector<2x128xi32>
    %51 = arith.select %49, %47, %50 : vector<2x128xi1>, vector<2x128xi32>
    %cst_23 = arith.constant dense<2147483647> : vector<2xi32>
    %52 = vector.multi_reduction <minsi>, %51, %cst_23 [1] : vector<2x128xi32> to vector<2xi32>
    %53 = vector.shape_cast %52 : vector<2xi32> to vector<2x1xi32>
    %54 = vector.broadcast %53 : vector<2x1xi32> to vector<2x128xi32>
    %55 = arith.cmpi eq, %47, %54 : vector<2x128xi32>
    %56 = arith.extui %55 : vector<2x128xi1> to vector<2x128xi32>
    %57 = arith.sitofp %56 : vector<2x128xi32> to vector<2x128xf32>
    %58 = arith.mulf %42, %57 : vector<2x128xf32>
    %cst_24 = arith.constant dense<0.000000e+00> : vector<2xf32>
    %59 = vector.multi_reduction <add>, %58, %cst_24 [1] : vector<2x128xf32> to vector<2xf32>
    %60 = vector.shape_cast %59 : vector<2xf32> to vector<2x1xf32>
    %cst_25 = arith.constant dense<0.000000e+00> : vector<2x32xf32>
    %61 = tpu.matmul %57, %4, %cst_25 {dimension_numbers = #tpu.dot_dimension_numbers<[1], [0], [0], [1], [0, 0, 1, 1], [], []>} : vector<2x128xf32>, vector<128x32xf32>, vector<2x32xf32> -> vector<2x32xf32>
    %62 = arith.addf %6, %61 : vector<2x32xf32>
    %63 = vector.broadcast %5 : vector<1x32xf32> to vector<2x32xf32>
    %64 = arith.addf %62, %63 : vector<2x32xf32>
    %c0_26 = arith.constant 0 : index
    %c0_27 = arith.constant 0 : index
    %65 = vector.load %arg6[%c0_26, %c0_27] : memref<2x1xi32, #tpu.memory_space<vmem>>, vector<2x1xi32>
    tpu.vector_store %arg6[%c0_26, %c0_27], %53 {strides = array<i32>} : memref<2x1xi32, #tpu.memory_space<vmem>>, vector<2x1xi32>,
    %c0_28 = arith.constant 0 : index
    %c0_29 = arith.constant 0 : index
    %66 = vector.load %arg7[%c0_28, %c0_29] : memref<2x1xf32, #tpu.memory_space<vmem>>, vector<2x1xf32>
    tpu.vector_store %arg7[%c0_28, %c0_29], %60 {strides = array<i32>} : memref<2x1xf32, #tpu.memory_space<vmem>>, vector<2x1xf32>,
    %c0_30 = arith.constant 0 : index
    %c0_31 = arith.constant 0 : index
    %67 = vector.load %arg8[%c0_30, %c0_31] : memref<2x32xf32, #tpu.memory_space<vmem>>, vector<2x32xf32>
    tpu.vector_store %arg8[%c0_30, %c0_31], %64 {strides = array<i32>} : memref<2x32xf32, #tpu.memory_space<vmem>>, vector<2x32xf32>,
    return
  }
  func.func @transform_0(%arg0: i32) -> (i32, i32) {
    %c0_i32 = arith.constant 0 : i32
    %c0_i32_0 = arith.constant 0 : i32
    return %arg0, %c0_i32 : i32, i32
  }
  func.func @transform_1(%arg0: i32) -> (i32, i32, i32) {
    %c0_i32 = arith.constant 0 : i32
    %c0_i32_0 = arith.constant 0 : i32
    %c0_i32_1 = arith.constant 0 : i32
    return %arg0, %c0_i32, %c0_i32_0 : i32, i32, i32
  }
  func.func @transform_2(%arg0: i32) -> (i32, i32) {
    %c0_i32 = arith.constant 0 : i32
    %c0_i32_0 = arith.constant 0 : i32
    return %arg0, %c0_i32 : i32, i32
  }
  func.func @transform_3(%arg0: i32) -> (i32, i32) {
    %c0_i32 = arith.constant 0 : i32
    %c0_i32_0 = arith.constant 0 : i32
    return %arg0, %c0_i32 : i32, i32
  }
  func.func @transform_4(%arg0: i32) -> (i32, i32) {
    %c0_i32 = arith.constant 0 : i32
    %c0_i32_0 = arith.constant 0 : i32
    %c0_i32_1 = arith.constant 0 : i32
    return %c0_i32, %c0_i32_0 : i32, i32
  }
  func.func @transform_5(%arg0: i32) -> (i32, i32) {
    %c0_i32 = arith.constant 0 : i32
    %c0_i32_0 = arith.constant 0 : i32
    return %arg0, %c0_i32 : i32, i32
  }
  func.func @transform_6(%arg0: i32) -> (i32, i32) {
    %c0_i32 = arith.constant 0 : i32
    %c0_i32_0 = arith.constant 0 : i32
    return %arg0, %c0_i32 : i32, i32
  }
  func.func @transform_7(%arg0: i32) -> (i32, i32) {
    %c0_i32 = arith.constant 0 : i32
    %c0_i32_0 = arith.constant 0 : i32
    return %arg0, %c0_i32 : i32, i32
  }
}

</mosaic_0001>

<bundles_post_ra>
// kernel: mul.1
= control target key start
LH: loop header
LB: loop body
LE: loop exit
PB: predicated region body
PF: predicated region fallthrough
CT: control target
= control target key end

     0   :  { %3 = vsyncpa [#allocation1], 0  ;;  %s80_s0 = inlined_call_operand.vmem [shape: f32[2], index: 0, kind: input, shape index: {}]   ;;  %s81_s1 = inlined_call_operand.vmem [shape: f32[2], index: 1, kind: input, shape index: {}]   ;;  %s82_s2 = inlined_call_operand.hbm [shape: f32[2], index: 2, kind: output, shape index: {}]  }
   0x1   :  { %v4_v0 = vld [vmem:[%s80_s0] sm:$0x1] }
   0x2   :  { %v5_v1 = vld [vmem:[%s81_s1] sm:$0x1]  ;;  %s46_s1 = smov [#allocation0]  }
   0x3   :  { %v8_v2 = vmul.f32 %v5_v1, %v4_v0  ;;  %s15_s12 = sshll.u32 %s46_s1, 4  ;;  %s16_s12 = int_to_ptr.vmem [resolvable:$true] %s15_s12 }
   0x4   :  { %s22_s13 = scalar_lea.vmem %s16_s12, 16  ;;  %s26_s14 = scalar_lea.vmem %s16_s12, 32 }
   0x5   :  { %10 = vst [vmem:[#allocation0] sm:$0x1] %v8_v2  ;;  %p23_p0 = scmp.ne.s32.totalorder %s16_s12, %s22_s13  ;;  %p27_p1 = scmp.lt.s32.totalorder %s16_s12, %s16_s12 }
   0x6   :  { %p28_p2 = scmp.lt.s32.totalorder %s26_s14, %s22_s13 }
   0x8   :  { %p29_p3 = por %p28_p2, %p27_p1 }
   0xa   :  { %p30_p4 = pnand %p29_p3, %p23_p0 }
   0xc   :  { %33 = shalt.err (!%p30_p4)
}
   0xd   :  { %s34_s17 = scalar_lea.hbm %s82_s2, 16 }
   0xe   :  { %p35_p5 = scmp.ne.s32.totalorder %s82_s2, %s34_s17  ;;  %p38_p6 = scmp.lt.u32.totalorder %s34_s17, %s82_s2 }
  0x10   :  { %p40_p7 = pnand %p38_p6, %p35_p5 }
  0x12   :  { %43 = shalt.err (!%p40_p7)
}
  0x13   :  { %18 = dma.vmem_to_hbm [thread:$0]  %s16_s12, 16, %s82_s2, [#allocation1]  }
  0x14   :  { %44 = dma.done.wait [#allocation1], 16  }
  0x15   :  { %45 = vsyncadd [#allocation1], 4294967280 }
  0x16   :  { %20 = vsyncpa [#allocation1], 1 }

</bundles_post_ra>
